<compile_context>
chip_gen: v5e
topology: v5e:2x2
jax: 0.10.0
libtpu: 0.0.40
codegen_flags: <defaults>
</compile_context>

<pallas_src>
import functools

import jax
import jax.numpy as jnp
from jax.experimental import pallas as pl
from jax.experimental.pallas import tpu as pltpu

LANE = 128
MAX_TILE_B = 256  # rows fed to each MXU matmul per grid step (review: M>=256 on v6e/v7x)


def _round_up(v, m=LANE):
    return ((v + m - 1) // m) * m


def _pad_axis(a, target, axis):
    pad = target - a.shape[axis]
    if pad == 0:
        return a
    widths = [(0, 0)] * a.ndim
    widths[axis] = (0, pad)
    return jnp.pad(a, widths)


def attention_layer_kernel(x_ref, w1_ref, b1_ref, w2_ref, b2_ref, w3_ref, b3_ref,
                           out_ref, *, n_num, batch, tile_b, inv_t, inv_b):
    step = pl.program_id(0)

    @pl.when(step == 0)
    def _():
        out_ref[...] = jnp.zeros_like(out_ref)

    # fc1 + ReLU  (bf16 MXU operands, f32 accumulate; weights already bf16)
    x = x_ref[...].astype(jnp.bfloat16)                               # (tile_b, in_dim)
    h1 = jnp.dot(x, w1_ref[...], preferred_element_type=jnp.float32) + b1_ref[...]
    h1 = jnp.maximum(h1, 0.0)                                         # (tile_b, 512) f32

    # fc2 + ReLU
    h2 = jnp.dot(h1.astype(jnp.bfloat16), w2_ref[...],
                 preferred_element_type=jnp.float32) + b2_ref[...]
    h2 = jnp.maximum(h2, 0.0)                                         # (tile_b, 128) f32

    # fc3 + sigmoid
    h3 = jnp.dot(h2.astype(jnp.bfloat16), w3_ref[...],
                 preferred_element_type=jnp.float32) + b3_ref[...]
    h3 = jax.nn.sigmoid(h3)                                           # (tile_b, nn_p) f32

    # softmax over dim=1 of (sigmoid(x) / T); mask padded output lanes
    logits = h3 * inv_t
    col_valid = jax.lax.broadcasted_iota(jnp.int32, logits.shape, 1) < n_num
    logits = jnp.where(col_valid, logits, jnp.float32(-1e30))
    m = jnp.max(logits, axis=1, keepdims=True)
    e = jnp.where(col_valid, jnp.exp(logits - m), 0.0)
    denom = jnp.sum(e, axis=1, keepdims=True)
    attn = e * pl.reciprocal(denom, approx=True)                      # (tile_b, nn_p)

    # mask rows beyond the true batch (only relevant when B was padded up)
    row_valid = (step * tile_b
                 + jax.lax.broadcasted_iota(jnp.int32, attn.shape, 0)) < batch
    attn = jnp.where(row_valid, attn, 0.0)

    # accumulate the batch mean into the VMEM-resident output block
    out_ref[...] += jnp.sum(attn, axis=0, keepdims=True) * inv_b      # (1, nn_p)


def prepare_params(params):
    """Pad + cast the Linear params ONCE (call outside the per-step hot path).

    Weights -> bf16 with lane-padded *output* dims only (contraction dims keep
    their true size except where they must match a padded producer).
    Biases stay f32, lane-padded.  Zero padding contributes exactly zero to the
    dots; padded softmax lanes are masked in-kernel.
    """
    w1, b1, w2, b2, w3, b3 = params
    in_dim = w1.shape[0]                  # true contraction dim, NOT padded
    h1_p = _round_up(w1.shape[1])         # 500 -> 512
    h2_p = _round_up(w2.shape[1])         # 100 -> 128
    n_num = w3.shape[1]
    nn_p = _round_up(n_num)               # n_num -> 128

    w1_p = _pad_axis(w1, h1_p, 1).astype(jnp.bfloat16)                       # (in_dim, 512)
    w2_p = _pad_axis(_pad_axis(w2, h1_p, 0), h2_p, 1).astype(jnp.bfloat16)   # (512, 128)
    w3_p = _pad_axis(_pad_axis(w3, h2_p, 0), nn_p, 1).astype(jnp.bfloat16)   # (128, 128)
    b1_p = _pad_axis(b1, h1_p, 1).astype(jnp.float32)
    b2_p = _pad_axis(b2, h2_p, 1).astype(jnp.float32)
    b3_p = _pad_axis(b3, nn_p, 1).astype(jnp.float32)

    prepared = tuple(jax.device_put(a) for a in
                     (w1_p, b1_p, w2_p, b2_p, w3_p, b3_p))
    return prepared, n_num, in_dim


@functools.partial(jax.jit, static_argnums=(2,))
def attention_layer_forward(x, prepared, n_num):
    """x: (B, n_num * last_dim) f32 -> (n_num,) f32 (matches torch .squeeze())."""
    w1_p, b1_p, w2_p, b2_p, w3_p, b3_p = prepared
    B, in_dim = x.shape
    assert in_dim == w1_p.shape[0]
    nn_p = w3_p.shape[1]

    # batch tiling: one grid step for small B; M=256 rows/step for large B
    if B <= MAX_TILE_B:
        tile_b, b_pad = B, B
    else:
        tile_b = MAX_TILE_B
        b_pad = _round_up(B, MAX_TILE_B)
    x_p = _pad_axis(x, b_pad, 0)          # no-op when b_pad == B
    grid = (b_pad // tile_b,)

    vmem = pltpu.MemorySpace.VMEM
    const0 = lambda i: (0, 0)             # weights/biases stay VMEM-resident
    kernel = functools.partial(
        attention_layer_kernel,
        n_num=n_num, batch=B, tile_b=tile_b, inv_t=1.0 / 10.0, inv_b=1.0 / B)

    out = pl.pallas_call(
        kernel,
        out_shape=jax.ShapeDtypeStruct((1, nn_p), jnp.float32),
        grid=grid,
        in_specs=[
            pl.BlockSpec((tile_b, in_dim), lambda i: (i, 0), memory_space=vmem),
            pl.BlockSpec(w1_p.shape, const0, memory_space=vmem),
            pl.BlockSpec(b1_p.shape, const0, memory_space=vmem),
            pl.BlockSpec(w2_p.shape, const0, memory_space=vmem),
            pl.BlockSpec(b2_p.shape, const0, memory_space=vmem),
            pl.BlockSpec(w3_p.shape, const0, memory_space=vmem),
            pl.BlockSpec(b3_p.shape, const0, memory_space=vmem),
        ],
        out_specs=pl.BlockSpec((1, nn_p), const0, memory_space=vmem),
        compiler_params=pltpu.CompilerParams(
            dimension_semantics=("arbitrary",)),   # batch axis is the mean reduction
    )(x_p, w1_p, b1_p, w2_p, b2_p, w3_p, b3_p)
    return out[0, :n_num]                 # squeeze + drop padded lanes -> (n_num,)


def init_params(key, last_dim, n_num):
    """Kaiming-normal weights (gain=sqrt(2), fan_in) + PyTorch-style uniform biases."""
    in_dim = n_num * last_dim
    dims = [(in_dim, 500), (500, 100), (100, n_num)]
    params = []
    for (fan_in, fan_out) in dims:
        key, kw, kb = jax.random.split(key, 3)
        std = (2.0 / fan_in) ** 0.5
        w = std * jax.random.normal(kw, (fan_in, fan_out), dtype=jnp.float32)
        bound = 1.0 / (fan_in ** 0.5)
        b = jax.random.uniform(kb, (1, fan_out), minval=-bound, maxval=bound,
                               dtype=jnp.float32)
        params += [w, b]
    return tuple(params)


if __name__ == "__main__":
    key = jax.random.PRNGKey(0)

    # Small shapes implied by the forward: x is (batch, n_num * last_dim).
    batch, last_dim, n_num = 8, 8, 4

    key, kx = jax.random.split(key)
    x = jax.random.normal(kx, (batch, n_num * last_dim), dtype=jnp.float32)

    params = init_params(key, last_dim, n_num)
    prepared, n_num_out, _ = prepare_params(params)   # one-time pad + bf16 cast

    out = attention_layer_forward(x, prepared, n_num_out)
    jax.block_until_ready(out)

    # Pure-JAX f32 reference of the same math (kernel uses bf16 MXU operands,
    # so tolerance is relaxed; observed error ~1e-4).
    w1, b1, w2, b2, w3, b3 = params
    h = jnp.maximum(x @ w1 + b1, 0.0)
    h = jnp.maximum(h @ w2 + b2, 0.0)
    h = jax.nn.sigmoid(h @ w3 + b3)
    ref = jnp.mean(jax.nn.softmax(h / 10.0, axis=1), axis=0)
    assert out.shape == (n_num,)
    assert jnp.allclose(out, ref, atol=1e-2), (out, ref)
    assert bool(jnp.all(jnp.isfinite(out)))

    print("KERNEL_OK")
</pallas_src>

<mosaic_0001>
module attributes {stable_mosaic.version = 11 : i64} {
  func.func @attention_layer_kernel(%arg0: i32, %arg1: memref<8x32xf32, #tpu.memory_space<vmem>>, %arg2: memref<32x512xbf16, #tpu.memory_space<vmem>>, %arg3: memref<1x512xf32, #tpu.memory_space<vmem>>, %arg4: memref<512x128xbf16, #tpu.memory_space<vmem>>, %arg5: memref<1x128xf32, #tpu.memory_space<vmem>>, %arg6: memref<128x128xbf16, #tpu.memory_space<vmem>>, %arg7: memref<1x128xf32, #tpu.memory_space<vmem>>, %arg8: memref<1x128xf32, #tpu.memory_space<vmem>>) attributes {dimension_semantics = [#tpu.dimension_semantics<arbitrary>], iteration_bounds = array<i64: 1>, scalar_prefetch = 0 : i64, scratch_operands = 0 : i64, tpu.core_type = #tpu.core_type<tc>, window_params = [{transform_indices = @transform_0, window_bounds = array<i64: 8, 32>}, {pipeline_mode = #tpu.pipeline_mode<synchronous>, transform_indices = @transform_1, window_bounds = array<i64: 32, 512>}, {pipeline_mode = #tpu.pipeline_mode<synchronous>, transform_indices = @transform_2, window_bounds = array<i64: 1, 512>}, {pipeline_mode = #tpu.pipeline_mode<synchronous>, transform_indices = @transform_3, window_bounds = array<i64: 512, 128>}, {pipeline_mode = #tpu.pipeline_mode<synchronous>, transform_indices = @transform_4, window_bounds = array<i64: 1, 128>}, {pipeline_mode = #tpu.pipeline_mode<synchronous>, transform_indices = @transform_5, window_bounds = array<i64: 128, 128>}, {pipeline_mode = #tpu.pipeline_mode<synchronous>, transform_indices = @transform_6, window_bounds = array<i64: 1, 128>}, {pipeline_mode = #tpu.pipeline_mode<synchronous>, transform_indices = @transform_7, window_bounds = array<i64: 1, 128>}]} {
    %c0_i32 = arith.constant 0 : i32
    %0 = arith.cmpi eq, %arg0, %c0_i32 : i32
    %1 = arith.extui %0 : i1 to i32
    %c0_i32_0 = arith.constant 0 : i32
    %2 = arith.cmpi ne, %1, %c0_i32_0 : i32
    scf.if %2 {
      %cst_32 = arith.constant 0.000000e+00 : f32
      %65 = vector.broadcast %cst_32 : f32 to vector<1x128xf32>
      %c0_33 = arith.constant 0 : index
      %c0_34 = arith.constant 0 : index
      %66 = vector.load %arg8[%c0_33, %c0_34] : memref<1x128xf32, #tpu.memory_space<vmem>>, vector<1x128xf32>
      tpu.vector_store %arg8[%c0_33, %c0_34], %65 {strides = array<i32>} : memref<1x128xf32, #tpu.memory_space<vmem>>, vector<1x128xf32>,
    } else {
    }
    %c0 = arith.constant 0 : index
    %c0_1 = arith.constant 0 : index
    %3 = vector.load %arg1[%c0, %c0_1] : memref<8x32xf32, #tpu.memory_space<vmem>>, vector<8x32xf32>
    %4 = arith.truncf %3 : vector<8x32xf32> to vector<8x32xbf16>
    %c0_2 = arith.constant 0 : index
    %c0_3 = arith.constant 0 : index
    %5 = vector.load %arg2[%c0_2, %c0_3] : memref<32x512xbf16, #tpu.memory_space<vmem>>, vector<32x512xbf16>
    %cst = arith.constant dense<0.000000e+00> : vector<8x512xf32>
    %6 = tpu.matmul %4, %5, %cst {dimension_numbers = #tpu.dot_dimension_numbers<[1], [0], [0], [1], [0, 0, 1, 1], [], []>} : vector<8x32xbf16>, vector<32x512xbf16>, vector<8x512xf32> -> vector<8x512xf32>
    %c0_4 = arith.constant 0 : index
    %c0_5 = arith.constant 0 : index
    %7 = vector.load %arg3[%c0_4, %c0_5] : memref<1x512xf32, #tpu.memory_space<vmem>>, vector<1x512xf32>
    %8 = vector.broadcast %7 : vector<1x512xf32> to vector<8x512xf32>
    %9 = arith.addf %6, %8 : vector<8x512xf32>
    %cst_6 = arith.constant 0.000000e+00 : f32
    %10 = vector.broadcast %cst_6 : f32 to vector<8x512xf32>
    %11 = arith.maximumf %9, %10 : vector<8x512xf32>
    %12 = arith.truncf %11 : vector<8x512xf32> to vector<8x512xbf16>
    %c0_7 = arith.constant 0 : index
    %c0_8 = arith.constant 0 : index
    %13 = vector.load %arg4[%c0_7, %c0_8] : memref<512x128xbf16, #tpu.memory_space<vmem>>, vector<512x128xbf16>
    %cst_9 = arith.constant dense<0.000000e+00> : vector<8x128xf32>
    %14 = tpu.matmul %12, %13, %cst_9 {dimension_numbers = #tpu.dot_dimension_numbers<[1], [0], [0], [1], [0, 0, 1, 1], [], []>} : vector<8x512xbf16>, vector<512x128xbf16>, vector<8x128xf32> -> vector<8x128xf32>
    %c0_10 = arith.constant 0 : index
    %c0_11 = arith.constant 0 : index
    %15 = vector.load %arg5[%c0_10, %c0_11] : memref<1x128xf32, #tpu.memory_space<vmem>>, vector<1x128xf32>
    %16 = vector.broadcast %15 : vector<1x128xf32> to vector<8x128xf32>
    %17 = arith.addf %14, %16 : vector<8x128xf32>
    %cst_12 = arith.constant 0.000000e+00 : f32
    %18 = vector.broadcast %cst_12 : f32 to vector<8x128xf32>
    %19 = arith.maximumf %17, %18 : vector<8x128xf32>
    %20 = arith.truncf %19 : vector<8x128xf32> to vector<8x128xbf16>
    %c0_13 = arith.constant 0 : index
    %c0_14 = arith.constant 0 : index
    %21 = vector.load %arg6[%c0_13, %c0_14] : memref<128x128xbf16, #tpu.memory_space<vmem>>, vector<128x128xbf16>
    %cst_15 = arith.constant dense<0.000000e+00> : vector<8x128xf32>
    %22 = tpu.matmul %20, %21, %cst_15 {dimension_numbers = #tpu.dot_dimension_numbers<[1], [0], [0], [1], [0, 0, 1, 1], [], []>} : vector<8x128xbf16>, vector<128x128xbf16>, vector<8x128xf32> -> vector<8x128xf32>
    %c0_16 = arith.constant 0 : index
    %c0_17 = arith.constant 0 : index
    %23 = vector.load %arg7[%c0_16, %c0_17] : memref<1x128xf32, #tpu.memory_space<vmem>>, vector<1x128xf32>
    %24 = vector.broadcast %23 : vector<1x128xf32> to vector<8x128xf32>
    %25 = arith.addf %22, %24 : vector<8x128xf32>
    %26 = arith.negf %25 : vector<8x128xf32>
    %27 = math.exp %26 : vector<8x128xf32>
    %cst_18 = arith.constant 1.000000e+00 : f32
    %28 = vector.broadcast %cst_18 : f32 to vector<8x128xf32>
    %29 = arith.addf %28, %27 : vector<8x128xf32>
    %30 = arith.divf %28, %29 : vector<8x128xf32>
    %cst_19 = arith.constant 1.000000e-01 : f32
    %31 = vector.broadcast %cst_19 : f32 to vector<8x128xf32>
    %32 = arith.mulf %30, %31 : vector<8x128xf32>
    %33 = tpu.iota {dimensions = array<i32: 1>} : vector<8x128xi32>
    %c4_i32 = arith.constant 4 : i32
    %34 = vector.broadcast %c4_i32 : i32 to vector<8x128xi32>
    %35 = arith.cmpi slt, %33, %34 : vector<8x128xi32>
    %cst_20 = arith.constant -1.000000e+30 : f32
    %36 = vector.broadcast %cst_20 : f32 to vector<8x128xf32>
    %37 = arith.select %35, %32, %36 : vector<8x128xi1>, vector<8x128xf32>
    %cst_21 = arith.constant dense<0xFF800000> : vector<8xf32>
    %38 = vector.multi_reduction <maximumf>, %37, %cst_21 [1] : vector<8x128xf32> to vector<8xf32>
    %39 = vector.shape_cast %38 : vector<8xf32> to vector<8x1xf32>
    %40 = vector.broadcast %39 : vector<8x1xf32> to vector<8x128xf32>
    %41 = arith.subf %37, %40 : vector<8x128xf32>
    %42 = math.exp %41 : vector<8x128xf32>
    %cst_22 = arith.constant 0.000000e+00 : f32
    %43 = vector.broadcast %cst_22 : f32 to vector<8x128xf32>
    %44 = arith.select %35, %42, %43 : vector<8x128xi1>, vector<8x128xf32>
    %cst_23 = arith.constant dense<0.000000e+00> : vector<8xf32>
    %45 = vector.multi_reduction <add>, %44, %cst_23 [1] : vector<8x128xf32> to vector<8xf32>
    %46 = vector.shape_cast %45 : vector<8xf32> to vector<8x1xf32>
    %47 = tpu.reciprocal %46 {approx = true} : vector<8x1xf32> -> vector<8x1xf32>
    %48 = vector.broadcast %47 : vector<8x1xf32> to vector<8x128xf32>
    %49 = arith.mulf %44, %48 : vector<8x128xf32>
    %c8_i32 = arith.constant 8 : i32
    %50 = arith.muli %arg0, %c8_i32 : i32
    %51 = tpu.iota {dimensions = array<i32: 0>} : vector<8x128xi32>
    %52 = vector.broadcast %50 : i32 to vector<8x128xi32>
    %53 = arith.addi %52, %51 : vector<8x128xi32>
    %c8_i32_24 = arith.constant 8 : i32
    %54 = vector.broadcast %c8_i32_24 : i32 to vector<8x128xi32>
    %55 = arith.cmpi slt, %53, %54 : vector<8x128xi32>
    %cst_25 = arith.constant 0.000000e+00 : f32
    %56 = vector.broadcast %cst_25 : f32 to vector<8x128xf32>
    %57 = arith.select %55, %49, %56 : vector<8x128xi1>, vector<8x128xf32>
    %c0_26 = arith.constant 0 : index
    %c0_27 = arith.constant 0 : index
    %58 = vector.load %arg8[%c0_26, %c0_27] : memref<1x128xf32, #tpu.memory_space<vmem>>, vector<1x128xf32>
    %cst_28 = arith.constant dense<0.000000e+00> : vector<128xf32>
    %59 = vector.multi_reduction <add>, %57, %cst_28 [0] : vector<8x128xf32> to vector<128xf32>
    %60 = vector.shape_cast %59 : vector<128xf32> to vector<1x128xf32>
    %cst_29 = arith.constant 1.250000e-01 : f32
    %61 = vector.broadcast %cst_29 : f32 to vector<1x128xf32>
    %62 = arith.mulf %60, %61 : vector<1x128xf32>
    %63 = arith.addf %58, %62 : vector<1x128xf32>
    %c0_30 = arith.constant 0 : index
    %c0_31 = arith.constant 0 : index
    %64 = vector.load %arg8[%c0_30, %c0_31] : memref<1x128xf32, #tpu.memory_space<vmem>>, vector<1x128xf32>
    tpu.vector_store %arg8[%c0_30, %c0_31], %63 {strides = array<i32>} : memref<1x128xf32, #tpu.memory_space<vmem>>, vector<1x128xf32>,
    return
  }
  func.func @transform_0(%arg0: i32) -> (i32, i32) {
    %c0_i32 = arith.constant 0 : i32
    %c0_i32_0 = arith.constant 0 : i32
    return %arg0, %c0_i32 : i32, i32
  }
  func.func @transform_1(%arg0: i32) -> (i32, i32) {
    %c0_i32 = arith.constant 0 : i32
    %c0_i32_0 = arith.constant 0 : i32
    %c0_i32_1 = arith.constant 0 : i32
    return %c0_i32, %c0_i32_0 : i32, i32
  }
  func.func @transform_2(%arg0: i32) -> (i32, i32) {
    %c0_i32 = arith.constant 0 : i32
    %c0_i32_0 = arith.constant 0 : i32
    %c0_i32_1 = arith.constant 0 : i32
    return %c0_i32, %c0_i32_0 : i32, i32
  }
  func.func @transform_3(%arg0: i32) -> (i32, i32) {
    %c0_i32 = arith.constant 0 : i32
    %c0_i32_0 = arith.constant 0 : i32
    %c0_i32_1 = arith.constant 0 : i32
    return %c0_i32, %c0_i32_0 : i32, i32
  }
  func.func @transform_4(%arg0: i32) -> (i32, i32) {
    %c0_i32 = arith.constant 0 : i32
    %c0_i32_0 = arith.constant 0 : i32
    %c0_i32_1 = arith.constant 0 : i32
    return %c0_i32, %c0_i32_0 : i32, i32
  }
  func.func @transform_5(%arg0: i32) -> (i32, i32) {
    %c0_i32 = arith.constant 0 : i32
    %c0_i32_0 = arith.constant 0 : i32
    %c0_i32_1 = arith.constant 0 : i32
    return %c0_i32, %c0_i32_0 : i32, i32
  }
  func.func @transform_6(%arg0: i32) -> (i32, i32) {
    %c0_i32 = arith.constant 0 : i32
    %c0_i32_0 = arith.constant 0 : i32
    %c0_i32_1 = arith.constant 0 : i32
    return %c0_i32, %c0_i32_0 : i32, i32
  }
  func.func @transform_7(%arg0: i32) -> (i32, i32) {
    %c0_i32 = arith.constant 0 : i32
    %c0_i32_0 = arith.constant 0 : i32
    %c0_i32_1 = arith.constant 0 : i32
    return %c0_i32, %c0_i32_0 : i32, i32
  }
}

</mosaic_0001>

<bundles_post_ra>
// kernel: attention_layer_forward.1
= control target key start
LH: loop header
LB: loop body
LE: loop exit
PB: predicated region body
PF: predicated region fallthrough
CT: control target
= control target key end

     0   :  { %12 = vsyncpa [#allocation3], 0  ;;  %s1158_s0 = inlined_call_operand.hbm [shape: f32[8,32], index: 0, kind: input, shape index: {}]   ;;  %s1159_s1 = inlined_call_operand.hbm [shape: bf16[32,512], index: 1, kind: input, shape index: {}]   ;;  %s1160_s2 = inlined_call_operand.hbm [shape: f32[1,512], index: 2, kind: input, shape index: {}]   ;;  %s1161_s3 = inlined_call_operand.hbm [shape: bf16[512,128], index: 3, kind: input, shape index: {}]   ;;  %s1162_s4 = inlined_call_operand.vmem [shape: f32[1,128], index: 4, kind: input, shape index: {}]   ;;  %s1163_s5 = inlined_call_operand.hbm [shape: bf16[128,128], index: 5, kind: input, shape index: {}]   ;;  %s1164_s6 = inlined_call_operand.vmem [shape: f32[1,128], index: 6, kind: input, shape index: {}]   ;;  %s1165_s7 = inlined_call_operand.vmem [shape: f32[1,128], index: 7, kind: output, shape index: {}]  }
   0x1   :  { %13 = vsyncpa [#allocation5], 0  ;;  %s30_s26 = sshll.u32 %s1159_s1, 4  ;;  %s31_s26 = int_to_ptr.hbm [resolvable:$true] %s30_s26 }
   0x2   :  { %14 = vsyncpa [#allocation8], 0  ;;  %s1074_s27 = smov [#allocation4]   ;;  %s54_s8 = sshll.u32 %s1161_s3, 4  ;;  %s55_s8 = int_to_ptr.hbm [resolvable:$true] %s54_s8 }
   0x3   :  { %s32_s28 = sshll.u32 %s1074_s27, 4  ;;  %s1075_s9 = smov 256   ;;  %s33_s28 = int_to_ptr.vmem [resolvable:$true] %s32_s28 }
   0x4   :  { %s1076_s10 = smov 16   ;;  %s1077_s11 = smov [#allocation7]  }
   0x5   :  { %38 = dma.hbm_to_vmem [thread:$0]  %s31_s26, 1024, %s33_s28, [#allocation5], %s1075_s9, %s1075_s9, %s1076_s10  }
   0x6   :  { %s56_s12 = sshll.u32 %s1077_s11, 4  ;;  %s1078_s13 = smov 64   ;;  %s57_s12 = int_to_ptr.vmem [resolvable:$true] %s56_s12 }
   0x7   :  { %s1079_s14 = smov 4   ;;  %s20_s16 = sshll.u32 %s1158_s0, 4  ;;  %s21_s16 = int_to_ptr.hbm [resolvable:$true] %s20_s16 }
   0x8   :  { %62 = dma.hbm_to_vmem [thread:$0]  %s55_s8, 4096, %s57_s12, [#allocation8], %s1078_s13, %s1078_s13, %s1079_s14  }
   0x9   :  { %s1080_s17 = smov [#allocation2]   ;;  %s44_s20 = sshll.u32 %s1160_s2, 4  ;;  %s45_s20 = int_to_ptr.hbm [resolvable:$true] %s44_s20 }
   0xa   :  { %s22_s18 = sshll.u32 %s1080_s17, 4  ;;  %s1081_s21 = smov [#allocation6]   ;;  %s23_s18 = int_to_ptr.vmem [resolvable:$true] %s22_s18 }
   0xb   :  { %25 = dma.hbm_to_vmem [thread:$0]  %s21_s16, 128, %s23_s18, [#allocation3]  }
   0xc   :  { %s46_s22 = sshll.u32 %s1081_s21, 4  ;;  %s69_s25 = sshll.u32 %s1163_s5, 4  ;;  %s47_s22 = int_to_ptr.vmem [resolvable:$true] %s46_s22  ;;  %s70_s25 = int_to_ptr.hbm [resolvable:$true] %s69_s25 }
   0xd   :  { %49 = dma.hbm_to_vmem [thread:$0]  %s45_s20, 64, %s47_s22, [#allocation5]  }
   0xe   :  { %s1082_s0 = smov [#allocation9]  }
   0xf   :  { %s71_s26 = sshll.u32 %s1082_s0, 4  ;;  %s72_s26 = int_to_ptr.vmem [resolvable:$true] %s71_s26 }
  0x10   :  { %77 = dma.hbm_to_vmem [thread:$0]  %s70_s25, 1024, %s72_s26, [#allocation8], %s1078_s13, %s1078_s13, %s1079_s14  }
  0x11   :  { %1068 = dma.done.wait [#allocation3], 128  }
  0x12   :  { %1069 = vsyncadd [#allocation3], 4294967168 }
  0x13   :  { %1070 = dma.done.wait [#allocation5], 1088  }
  0x14   :  { %1071 = vsyncadd [#allocation5], 4294966208 }
  0x15   :  { %1072 = dma.done.wait [#allocation8], 5120  }
  0x16   :  { %1073 = vsyncadd [#allocation8], 4294962176  ;;  %v701_v0 = vld [vmem:[#allocation4 + $0x20] sm:$0xf]  ;;  %v886_v1 = vld [vmem:[#allocation4 + $0x2c] sm:$0xf0] }
  0x17   :  { %v709_v2 = vld [vmem:[#allocation4 + $0x28] sm:$0xf]  ;;  %v702_v3 = vor.u32 %v886_v1, %v701_v0  ;;  %v887_v4 = vld [vmem:[#allocation4 + $0x34] sm:$0xf0]  ;;  %v885_v5 = vld [vmem:[#allocation4 + $0x2c] sm:$0xf] }
  0x18   :  { %v711_v6 = vld [vmem:[#allocation4 + $0x38] sm:$0xf0]  ;;  %v710_v7 = vor.u32 %v887_v4, %v709_v2  ;;  %v685_v9 = vld [vmem:[#allocation4] sm:$0xf]  ;;  %v882_v10 = vld [vmem:[#allocation4 + $0xc] sm:$0xf0] }
  0x19   :  { %v714_v8 = vor.u32 %v885_v5, %v711_v6  ;;  %v693_v11 = vld [vmem:[#allocation4 + $0x8] sm:$0xf]  ;;  %176 = vmatpush.bf16.msra.mxu1 %v702_v3  ;;  %v686_v12 = vor.u32 %v882_v10, %v685_v9  ;;  %v883_v13 = vld [vmem:[#allocation4 + $0x14] sm:$0xf0]  ;;  %v881_v14 = vld [vmem:[#allocation4 + $0xc] sm:$0xf] }
  0x1a   :  { %v695_v15 = vld [vmem:[#allocation4 + $0x18] sm:$0xf0]  ;;  %202 = vmatpush.bf16.msra.mxu2 %v710_v7  ;;  %v694_v16 = vor.u32 %v883_v13, %v693_v11  ;;  %v884_v19 = vld [vmem:[#allocation4 + $0x24] sm:$0xf]  ;;  %v703_v20 = vld [vmem:[#allocation4 + $0x30] sm:$0xf0] }
  0x1b   :  { %215 = vmatpush.bf16.msra.mxu3 %v714_v8  ;;  %v698_v17 = vor.u32 %v881_v14, %v695_v15  ;;  %v106_v18 = vld [vmem:[#allocation2] sm:$0xff]  ;;  %v706_v21 = vor.u32 %v884_v19, %v703_v20  ;;  %v880_v22 = vld [vmem:[#allocation4 + $0x4] sm:$0xf]  ;;  %v687_v25 = vld [vmem:[#allocation4 + $0x10] sm:$0xf0]  ;;  %vm166_vm0 = vcmask 261120  }
  0x1c   :  { %v895_v23 = vld [vmem:[#allocation7 + $0x38] sm:$0xff]  ;;  %v107_v24 = vpack.c.bf16 %v106_v18, %v106_v18  ;;  %v894_v28 = vld [vmem:[#allocation7 + $0x30] sm:$0xff]  ;;  %v690_v29 = vor.u32 %v880_v22, %v687_v25  ;;  %v893_v33 = vld [vmem:[#allocation7 + $0x28] sm:$0xff] }
  0x1d   :  { %v911_v26 = vld [vmem:[#allocation7 + $0xb8] sm:$0xff]  ;;  %177 = vmatpush.bf16.msra.mxu1 %v686_v12  ;;  %490 = vmatpush.bf16.msra.mxu0 %v895_v23  ;;  %v910_v30 = vld [vmem:[#allocation7 + $0xb0] sm:$0xff]  ;;  %v909_v34 = vld [vmem:[#allocation7 + $0xa8] sm:$0xff] }
  0x1e   :  { %v919_v27 = vld [vmem:[#allocation7 + $0xf8] sm:$0xff]  ;;  %203 = vmatpush.bf16.msra.mxu2 %v694_v16  ;;  %v918_v31 = vld [vmem:[#allocation7 + $0xf0] sm:$0xff]  ;;  %v917_v35 = vld [vmem:[#allocation7 + $0xe8] sm:$0xff] }
  0x1f   :  { %216 = vmatpush.bf16.msra.mxu3 %v698_v17  ;;  %v903_v32 = vld [vmem:[#allocation7 + $0x78] sm:$0xff]  ;;  %v902_v36 = vld [vmem:[#allocation7 + $0x70] sm:$0xff]  ;;  %v892_v37 = vld [vmem:[#allocation7 + $0x20] sm:$0xff] }
  0x20   :  { %715 = vmatmul.msk.bf16.vlgmr.msra.gmra.mxu1 %vm166_vm0, %v107_v24  ;;  %v908_v38 = vld [vmem:[#allocation7 + $0xa0] sm:$0xff]  ;;  %v891_v40 = vld [vmem:[#allocation7 + $0x18] sm:$0xff]  ;;  %v890_v43 = vld [vmem:[#allocation7 + $0x10] sm:$0xff] }
  0x21   :  { %189 = vmatpush.bf16.msrb.mxu1 %v706_v21  ;;  %717 = vmatmul.msk.bf16.vlgmr.msra.gmra.mxu2 %vm166_vm0, %v107_v24  ;;  %v916_v39 = vld [vmem:[#allocation7 + $0xe0] sm:$0xff]  ;;  %v907_v41 = vld [vmem:[#allocation7 + $0x98] sm:$0xff]  ;;  %v889_v44 = vld [vmem:[#allocation7 + $0x8] sm:$0xff] }
  0x22   :  { %516 = vmatpush.bf16.msrb.mxu2 %v911_v26  ;;  %718 = vmatmul.msk.bf16.vlgmr.msra.gmra.mxu3 %vm166_vm0, %v107_v24  ;;  %v915_v42 = vld [vmem:[#allocation7 + $0xd8] sm:$0xff]  ;;  %v901_v45 = vld [vmem:[#allocation7 + $0x68] sm:$0xff]  ;;  %v906_v46 = vld [vmem:[#allocation7 + $0x90] sm:$0xff] }
  0x23   :  { %529 = vmatpush.bf16.msrb.mxu3 %v919_v27  ;;  %491 = vmatpush.bf16.msra.mxu0 %v894_v28  ;;  %v914_v47 = vld [vmem:[#allocation7 + $0xd0] sm:$0xff]  ;;  %v888_v48 = vld [vmem:[#allocation7] sm:$0xff]  ;;  %v905_v50 = vld [vmem:[#allocation7 + $0x88] sm:$0xff] }
  0x24   :  { %v900_v49 = vld [vmem:[#allocation7 + $0x60] sm:$0xff]  ;;  %v913_v51 = vld [vmem:[#allocation7 + $0xc8] sm:$0xff]  ;;  %v899_v52 = vld [vmem:[#allocation7 + $0x58] sm:$0xff] }
  0x25   :  { %190 = vmatpush.bf16.msrb.mxu1 %v690_v29  ;;  %v904_v53 = vld [vmem:[#allocation7 + $0x80] sm:$0xff]  ;;  %v898_v55 = vld [vmem:[#allocation7 + $0x50] sm:$0xff]  ;;  %v897_v56 = vld [vmem:[#allocation7 + $0x48] sm:$0xff] }
  0x26   :  { %517 = vmatpush.bf16.msrb.mxu2 %v910_v30  ;;  %v912_v54 = vld [vmem:[#allocation7 + $0xc0] sm:$0xff]  ;;  %v927_v58 = vld [vmem:[#allocation9 + $0x38] sm:$0xff]  ;;  %v926_v20 = vld [vmem:[#allocation9 + $0x30] sm:$0xff] }
  0x27   :  { %530 = vmatpush.bf16.msrb.mxu3 %v918_v31  ;;  %492 = vmatpush.bf16.msra.mxu0 %v893_v33  ;;  %v896_v57 = vld [vmem:[#allocation7 + $0x40] sm:$0xff]  ;;  %v116_v59 = vld [vmem:[#allocation6] sm:$0xf]  ;;  %v925_v21 = vld [vmem:[#allocation9 + $0x28] sm:$0xff] }
  0x28   :  { %v118_v60 = vperm.slane %v116_v59, 0  ;;  %v120_v0 = vperm.slane %v116_v59, 2  ;;  %v121_v1 = vperm.slane %v116_v59, 3  ;;  %v119_v12 = vperm.slane %v116_v59, 1  ;;  %v924_v22 = vld [vmem:[#allocation9 + $0x20] sm:$0xff]  ;;  %v923_v23 = vld [vmem:[#allocation9 + $0x18] sm:$0xff] }
  0x29   :  { %503 = vmatpush.bf16.msra.mxu1 %v903_v32  ;;  %v921_v25 = vld [vmem:[#allocation9 + $0x8] sm:$0xff]  ;;  %v920_v26 = vld [vmem:[#allocation9] sm:$0xff]  ;;  %v938_v29 = vld [vmem:[%s1162_s4] ss:$0 sm:$0xff] }
  0x2a   :  { %518 = vmatpush.bf16.msrb.mxu2 %v909_v34 }
  0x2b   :  { %531 = vmatpush.bf16.msrb.mxu3 %v917_v35  ;;  %493 = vmatpush.bf16.msra.mxu0 %v892_v37 }
  0x2d   :  { %504 = vmatpush.bf16.msra.mxu1 %v902_v36 }
  0x2e   :  { %519 = vmatpush.bf16.msrb.mxu2 %v908_v38 }
  0x2f   :  { %532 = vmatpush.bf16.msrb.mxu3 %v916_v39  ;;  %494 = vmatpush.bf16.msra.mxu0 %v891_v40 }
  0x30   :  { %716 = vmatmul.msk.bf16.vlgmr.msrb.gmra.mxu1 %vm166_vm0, %v107_v24  ;;  %v922_v24 = vld [vmem:[#allocation9 + $0x10] sm:$0xff] }
  0x31   :  { %505 = vmatpush.bf16.msra.mxu1 %v901_v45 }
  0x32   :  { %520 = vmatpush.bf16.msrb.mxu2 %v907_v41 }
  0x33   :  { %533 = vmatpush.bf16.msrb.mxu3 %v915_v42  ;;  %495 = vmatpush.bf16.msra.mxu0 %v890_v43  ;;  %v939_v42 = vld [vmem:[%s1164_s6] ss:$0 sm:$0xff] }
  0x35   :  { %506 = vmatpush.bf16.msra.mxu1 %v900_v49 }
  0x36   :  { %521 = vmatpush.bf16.msrb.mxu2 %v906_v46 }
  0x37   :  { %496 = vmatpush.bf16.msra.mxu0 %v889_v44  ;;  %534 = vmatpush.bf16.msrb.mxu3 %v914_v47 }
  0x39   :  { %507 = vmatpush.bf16.msra.mxu1 %v899_v52 }
  0x3a   :  { %522 = vmatpush.bf16.msrb.mxu2 %v905_v50 }
  0x3b   :  { %497 = vmatpush.bf16.msra.mxu0 %v888_v48  ;;  %535 = vmatpush.bf16.msrb.mxu3 %v913_v51  ;;  %v645_v51 = vlaneseq }
  0x3d   :  { %508 = vmatpush.bf16.msra.mxu1 %v898_v55 }
  0x3e   :  { %523 = vmatpush.bf16.msrb.mxu2 %v904_v53 }
  0x3f   :  { %536 = vmatpush.bf16.msrb.mxu3 %v912_v54  ;;  %612 = vmatpush.bf16.msrb.mxu0 %v927_v58 }
  0x41   :  { %509 = vmatpush.bf16.msra.mxu1 %v897_v56  ;;  %v646_v56 = vand.u32 127, %v645_v51 }
  0x43   :  { %613 = vmatpush.bf16.msrb.mxu0 %v926_v20  ;;  %vm647_vm5 = vcmp.lt.s32.totalorder %v646_v56, 4 }
  0x45   :  { %510 = vmatpush.bf16.msra.mxu1 %v896_v57 }
  0x47   :  { %614 = vmatpush.bf16.msrb.mxu0 %v925_v21 }
  0x4b   :  { %615 = vmatpush.bf16.msrb.mxu0 %v924_v22 }
  0x4f   :  { %616 = vmatpush.bf16.msrb.mxu0 %v923_v23 }
  0x53   :  { %617 = vmatpush.bf16.msrb.mxu0 %v922_v24 }
  0x57   :  { %618 = vmatpush.bf16.msrb.mxu0 %v921_v25 }
  0x5b   :  { %619 = vmatpush.bf16.msrb.mxu0 %v920_v26 }
  0x9d   :  { %v179_v61 = vpop.f32.mrf.mxu1 }
  0x9e   :  { %v180_v62 = vadd.f32 %v179_v61, %v118_v60 }
  0xa0   :  { %v222_v63 = vmax.f32 %v180_v62, 0.0 }
  0xa2   :  { %v226_v2 = vpack.c.bf16 %v222_v63, %v222_v63  ;;  %v1083_v63 = vmov 0.0  }
  0xa3   :  { %105 = vst [vmem:[%s1165_s7] sm:$0x1] %v1083_v63 }
  0xa4   :  { %v205_v3 = vpop.f32.mrf.mxu2  ;;  %498 = vmatmul.bf16.vlgmr.msra.gmra.mxu0 %v226_v2 }
  0xa5   :  { %v218_v4 = vpop.f32.mrf.mxu3  ;;  %v206_v5 = vadd.f32 %v205_v3, %v120_v0  ;;  %v181_v7 = vpop.f32.mrf.mxu1 }
  0xa6   :  { %v219_v6 = vadd.f32 %v218_v4, %v121_v1 }
  0xa7   :  { %v224_v8 = vmax.f32 %v206_v5, 0.0 }
  0xa8   :  { %v225_v9 = vmax.f32 %v219_v6, 0.0 }
  0xa9   :  { %v228_v10 = vpack.c.bf16 %v224_v8, %v224_v8 }
  0xaa   :  { %v229_v11 = vpack.c.bf16 %v225_v9, %v225_v9 }
  0xab   :  { %524 = vmatmul.bf16.vlgmr.msrb.gmra.mxu2 %v228_v10 }
  0xac   :  { %537 = vmatmul.bf16.vlgmr.msrb.gmra.mxu3 %v229_v11  ;;  %v207_v13 = vpop.f32.mrf.mxu2 }
  0xad   :  { %v220_v14 = vpop.f32.mrf.mxu3  ;;  %v192_v15 = vpop.f32.mrf.mxu1 }
  0xae   :  { %v193_v16 = vadd.f32 %v192_v15, %v119_v12  ;;  %v666_v14 = vld [vmem:[%s1165_s7] sm:$0x1] }
  0xb0   :  { %v223_v17 = vmax.f32 %v193_v16, 0.0 }
  0xb2   :  { %v227_v18 = vpack.c.bf16 %v223_v17, %v223_v17 }
  0xb4   :  { %511 = vmatmul.bf16.vlgmr.msra.gmra.mxu1 %v227_v18 }
  0xb5   :  { %v194_v19 = vpop.f32.mrf.mxu1 }
 0x121   :  { %v499_v27 = vpop.f32.mrf.mxu0 }
 0x122   :  { %v500_v32 = vadd.f32 %v938_v29, %v499_v27 }
 0x129   :  { %v501_v28 = vpop.f32.mrf.mxu0 }
 0x12e   :  { %v525_v30 = vpop.f32.mrf.mxu2 }
 0x12f   :  { %v538_v31 = vpop.f32.mrf.mxu3 }
 0x131   :  { %v512_v33 = vpop.f32.mrf.mxu1 }
 0x132   :  { %v513_v34 = vadd.f32 %v512_v33, %v500_v32 }
 0x134   :  { %v526_v35 = vadd.f32 %v525_v30, %v513_v34 }
 0x136   :  { %v539_v36 = vadd.f32 %v538_v31, %v526_v35  ;;  %v527_v37 = vpop.f32.mrf.mxu2 }
 0x137   :  { %v540_v38 = vpop.f32.mrf.mxu3 }
 0x138   :  { %v542_v39 = vmax.f32 %v539_v36, 0.0 }
 0x139   :  { %v514_v40 = vpop.f32.mrf.mxu1 }
 0x13a   :  { %v543_v41 = vpack.c.bf16 %v542_v39, %v542_v39 }
 0x13c   :  { %620 = vmatmul.bf16.vlgmr.msrb.gmra.mxu0 %v543_v41 }
 0x1b9   :  { %v621_v43 = vpop.f32.mrf.mxu0 }
 0x1ba   :  { %v622_v44 = vadd.f32 %v939_v42, %v621_v43 }
 0x1bc   :  { %v879_v45 = vmul.f32 -1.442695, %v622_v44 }
 0x1be   :  { %940 = vpow2.f32 %v879_v45 }
 0x1c1   :  { %v623_v46 = vpop.f32.mrf.mxu0 }
 0x1c4   :  { %v941_v47 = vpop.eup %940 }
 0x1c5   :  { %v628_v48 = vadd.f32 1.0, %v941_v47 }
 0x1c7   :  { %942 = vrcp.f32 %v628_v48  ;;  %v640_v53 = vand.u32 2147483648, %v628_v48  ;;  %v638_v55 = vand.u32 2147483647, %v628_v48  ;;  %vm634_vm2 = vweird.f32 %v628_v48 }
 0x1c9   :  { %v641_v58 = vor.u32 1.1754944e-38, %v640_v53  ;;  %vm639_vm4 = vcmp.eq.f32.partialorder %v638_v55, 8.507059e+37 }
 0x1cd   :  { %v943_v49 = vpop.eup %942 }
 0x1ce   :  { %v630_v50 = vmul.f32 %v943_v49, %v628_v48  ;;  %vm635_vm1 = vweird.f32 %v943_v49 }
 0x1cf   :  { %vm636_vm3 = vmor %vm634_vm2, %vm635_vm1 }
 0x1d0   :  { %v631_v52 = vsub.f32 1.0, %v630_v50 }
 0x1d2   :  { %v632_v54 = vmul.f32 %v943_v49, %v631_v52 }
 0x1d4   :  { %v633_v57 = vadd.f32 %v943_v49, %v632_v54 }
 0x1d6   :  { %v637_v59 = vsel %vm636_vm3, %v943_v49, %v633_v57 }
 0x1d7   :  { %v642_v60 = vsel %vm639_vm4, %v641_v58, %v637_v59 }
 0x1d8   :  { %v644_v61 = vmul.f32 0.1, %v642_v60 }
 0x1da   :  { %v648_v62 = vsel %vm647_vm5, %v644_v61, -1e+30 }
 0x1db   :  { %649 = vmax.xlane.f32.xlu0 %v648_v62 }
 0x24e   :  { %v650_v0 = vpop.xlane.xlu0 %649 }
 0x24f   :  { %v651_v1 = vsub.f32 %v648_v62, %v650_v0 }
 0x251   :  { %v652_v2 = vmul.f32 1.442695, %v651_v1 }
 0x253   :  { %944 = vpow2.f32 %v652_v2 }
 0x259   :  { %v945_v3 = vpop.eup %944 }
 0x25a   :  { %v654_v4 = vsel %vm647_vm5, %v945_v3, 0.0 }
 0x25b   :  { %655 = vadd.xlane.f32.xlu0 %v654_v4 }
 0x2ce   :  { %v656_v5 = vpop.xlane.xlu0 %655 }
 0x2cf   :  { %946 = vrcp.f32 %v656_v5 }
 0x2d5   :  { %v947_v6 = vpop.eup %946 }
 0x2d6   :  { %v658_v7 = vmul.f32 %v947_v6, %v654_v4 }
 0x2d8   :  { %v667_v8 = vrot.slane %v658_v7, 4 }
 0x2da   :  { %v668_v9 = vadd.f32 %v667_v8, %v658_v7 }
 0x2dc   :  { %v669_v10 = vrot.slane %v668_v9, 2 }
 0x2de   :  { %v670_v11 = vadd.f32 %v669_v10, %v668_v9 }
 0x2e0   :  { %v671_v12 = vrot.slane %v670_v11, 1 }
 0x2e2   :  { %v672_v13 = vadd.f32 %v671_v12, %v670_v11 }
 0x2e4   :  { %v673_v15 = vmul.f32 0.125, %v672_v13 }
 0x2e6   :  { %v674_v16 = vadd.f32 %v673_v15, %v666_v14 }
 0x2e8   :  { %675 = vst [vmem:[%s1165_s7] sm:$0x1] %v674_v16 }
 0x2e9   :  { %680 = vsyncpa [#allocation3], 1 }
 0x2ea   :  { %681 = vsyncpa [#allocation5], 1 }
 0x2eb   :  { %682 = vsyncpa [#allocation8], 1 }

</bundles_post_ra>
